<compile_context>
chip_gen: v7x
topology: tpu7x:2x2x1
jax: 0.10.0
libtpu: 0.0.40
codegen_flags: <defaults>
</compile_context>

<pallas_src>
import functools

import jax
import jax.numpy as jnp
from jax.experimental import pallas as pl
from jax.experimental.pallas import tpu as pltpu

_OUT_PAD = 128  # lane-dense padded width of the 2-logit output head


def _silu_f32(x):
    # Keep SiLU (sigmoid + multiply) in f32: v5e has no bf16 VPU/EUP path.
    return x * jax.nn.sigmoid(x)


def reward_predictor_kernel(h_ref, s_ref,
                            w1h_ref, w1s_ref, b1_ref,
                            w2_ref, b2_ref,
                            w3p_ref, b3p_ref,
                            out_ref):
    """One batch tile: (TB, H) x (TB, S) -> (TB, 128) padded logits."""
    cd = w2_ref.dtype  # compute (storage/MXU) dtype, e.g. bf16

    h = h_ref[...]
    s = s_ref[...]

    # Dense layer 1: torch concat fused as two matmuls (same algebra, no concat op).
    x = (jnp.dot(h, w1h_ref[...], preferred_element_type=jnp.float32)
         + jnp.dot(s, w1s_ref[...], preferred_element_type=jnp.float32)
         + b1_ref[...])                       # bias kept in f32
    x = _silu_f32(x)

    # Dense layer 2 (activation_final = SiLU).
    x = jnp.dot(x.astype(cd), w2_ref[...],
                preferred_element_type=jnp.float32) + b2_ref[...]
    x = _silu_f32(x)

    # Output head -> 2 logits padded to 128 lanes (unmasked, lane-dense store).
    y = jnp.dot(x.astype(cd), w3p_ref[...],
                preferred_element_type=jnp.float32) + b3p_ref[...]
    out_ref[...] = y.astype(out_ref.dtype)


def _round_up(x, m):
    return ((x + m - 1) // m) * m


@functools.partial(jax.jit, static_argnames=("block_b", "compute_dtype"))
def reward_predictor(hidden, state, params, *, block_b=512,
                     compute_dtype=jnp.bfloat16):
    """hidden: (B, H), state: (B, S); returns (B, 2) float32 logits."""
    B, H = hidden.shape
    S = state.shape[1]
    w1h, w1s, b1, w2, b2, w3, b3 = params
    n_out = w3.shape[1]  # = 2

    # --- lane-dense output head: zero-pad (H, 2) -> (H, 128) ------------------
    w3p = jnp.pad(w3, ((0, 0), (0, _OUT_PAD - n_out)))
    b3p = jnp.pad(b3, ((0, 0), (0, _OUT_PAD - n_out)))

    # --- dtype plumbing: bf16 streaming, f32 biases/accumulation --------------
    cd = compute_dtype
    h_c, s_c = hidden.astype(cd), state.astype(cd)
    w1h_c, w1s_c = w1h.astype(cd), w1s.astype(cd)
    w2_c, w3p_c = w2.astype(cd), w3p.astype(cd)
    b1_f, b2_f, b3p_f = (b1.astype(jnp.float32), b2.astype(jnp.float32),
                         b3p.astype(jnp.float32))

    # --- batch tiling: TB multiple of 8, pad ragged tail with zero rows -------
    TB = max(8, min(block_b, _round_up(B, 8)))
    Bp = _round_up(B, TB)
    if Bp != B:
        h_c = jnp.pad(h_c, ((0, Bp - B), (0, 0)))
        s_c = jnp.pad(s_c, ((0, Bp - B), (0, 0)))
    num_tiles = pl.cdiv(Bp, TB)

    batch_spec = lambda feat: pl.BlockSpec((TB, feat), lambda i: (i, 0))
    resident = lambda shape: pl.BlockSpec(shape, lambda i: (0, 0))  # DMA'd once

    out_padded = pl.pallas_call(
        reward_predictor_kernel,
        out_shape=jax.ShapeDtypeStruct((Bp, _OUT_PAD), jnp.float32),
        grid=(num_tiles,),
        in_specs=[
            batch_spec(H),                 # hidden tile
            batch_spec(S),                 # state tile
            resident((H, H)),              # w1 (hidden half)
            resident((S, H)),              # w1 (state half)
            resident((1, H)),              # b1 (f32)
            resident((H, H)),              # w2
            resident((1, H)),              # b2 (f32)
            resident((H, _OUT_PAD)),       # w3 padded
            resident((1, _OUT_PAD)),       # b3 padded (f32)
        ],
        out_specs=pl.BlockSpec((TB, _OUT_PAD), lambda i: (i, 0)),
        compiler_params=pltpu.CompilerParams(
            dimension_semantics=("parallel",)),
    )(h_c, s_c, w1h_c, w1s_c, b1_f, w2_c, b2_f, w3p_c, b3p_f)

    # Drop batch padding and the zero-padded output lanes.
    return out_padded[:B, :n_out]


def init_params(key, hidden_dim, state_dim):
    """Deterministic init mimicking torch.nn.Linear (uniform +/- 1/sqrt(fan_in)).
    Weights stored as (in, out) == W.T relative to PyTorch."""
    ks = jax.random.split(key, 6)
    in1 = hidden_dim + state_dim

    def lin(kw, kb, fan_in, fan_out):
        lim = 1.0 / jnp.sqrt(jnp.float32(fan_in))
        w = jax.random.uniform(kw, (fan_in, fan_out), jnp.float32, -lim, lim)
        b = jax.random.uniform(kb, (1, fan_out), jnp.float32, -lim, lim)
        return w, b

    w1, b1 = lin(ks[0], ks[1], in1, hidden_dim)
    w2, b2 = lin(ks[2], ks[3], hidden_dim, hidden_dim)
    w3, b3 = lin(ks[4], ks[5], hidden_dim, 2)

    # Split W1 rows into the hidden-part and state-part (fused concat).
    w1h = w1[:hidden_dim, :]
    w1s = w1[hidden_dim:, :]
    return (w1h, w1s, b1, w2, b2, w3, b3)


def reward_predictor_ref(hidden, state, params, compute_dtype=jnp.float32):
    """Pure-JAX reference. compute_dtype mirrors the kernel's storage/MXU dtype."""
    w1h, w1s, b1, w2, b2, w3, b3 = params
    cd = compute_dtype
    x = (jnp.dot(hidden.astype(cd), w1h.astype(cd),
                 preferred_element_type=jnp.float32)
         + jnp.dot(state.astype(cd), w1s.astype(cd),
                   preferred_element_type=jnp.float32) + b1)
    x = jax.nn.silu(x)
    x = jnp.dot(x.astype(cd), w2.astype(cd),
                preferred_element_type=jnp.float32) + b2
    x = jax.nn.silu(x)
    return jnp.dot(x.astype(cd), w3.astype(cd),
                   preferred_element_type=jnp.float32) + b3


if __name__ == "__main__":
    # Small shapes; B=12 deliberately NOT a multiple of 8 to exercise tail padding.
    B, hidden_dim, state_dim = 12, 32, 32

    key = jax.random.PRNGKey(0)
    k_h, k_s, k_p = jax.random.split(key, 3)
    hidden = jax.random.normal(k_h, (B, hidden_dim), jnp.float32)
    state = jax.random.normal(k_s, (B, state_dim), jnp.float32)
    params = init_params(k_p, hidden_dim, state_dim)

    out = reward_predictor(hidden, state, params)
    out = jax.block_until_ready(out)
    assert out.shape == (B, 2), out.shape

    # Tight check against a reference that mirrors the bf16-storage / f32-accumulate path.
    ref_bf16 = reward_predictor_ref(hidden, state, params,
                                    compute_dtype=jnp.bfloat16)
    assert jnp.allclose(out, ref_bf16, atol=1e-3, rtol=1e-3), "mismatch vs bf16 reference"

    # Looser semantic check against the full-f32 PyTorch-equivalent forward.
    ref_f32 = reward_predictor_ref(hidden, state, params,
                                   compute_dtype=jnp.float32)
    assert jnp.allclose(out, ref_f32, atol=5e-2, rtol=5e-2), "mismatch vs f32 reference"

    print("KERNEL_OK")
</pallas_src>

<mosaic_0001>
module attributes {stable_mosaic.version = 11 : i64} {
  func.func @reward_predictor_kernel(%arg0: i32, %arg1: memref<16x32xbf16, #tpu.memory_space<vmem>>, %arg2: memref<16x32xbf16, #tpu.memory_space<vmem>>, %arg3: memref<32x32xbf16, #tpu.memory_space<vmem>>, %arg4: memref<32x32xbf16, #tpu.memory_space<vmem>>, %arg5: memref<1x32xf32, #tpu.memory_space<vmem>>, %arg6: memref<32x32xbf16, #tpu.memory_space<vmem>>, %arg7: memref<1x32xf32, #tpu.memory_space<vmem>>, %arg8: memref<32x128xbf16, #tpu.memory_space<vmem>>, %arg9: memref<1x128xf32, #tpu.memory_space<vmem>>, %arg10: memref<16x128xf32, #tpu.memory_space<vmem>>) attributes {dimension_semantics = [#tpu.dimension_semantics<parallel>], iteration_bounds = array<i64: 1>, scalar_prefetch = 0 : i64, scratch_operands = 0 : i64, tpu.core_type = #tpu.core_type<tc>, window_params = [{transform_indices = @transform_0, window_bounds = array<i64: 16, 32>}, {transform_indices = @transform_1, window_bounds = array<i64: 16, 32>}, {pipeline_mode = #tpu.pipeline_mode<synchronous>, transform_indices = @transform_2, window_bounds = array<i64: 32, 32>}, {pipeline_mode = #tpu.pipeline_mode<synchronous>, transform_indices = @transform_3, window_bounds = array<i64: 32, 32>}, {pipeline_mode = #tpu.pipeline_mode<synchronous>, transform_indices = @transform_4, window_bounds = array<i64: 1, 32>}, {pipeline_mode = #tpu.pipeline_mode<synchronous>, transform_indices = @transform_5, window_bounds = array<i64: 32, 32>}, {pipeline_mode = #tpu.pipeline_mode<synchronous>, transform_indices = @transform_6, window_bounds = array<i64: 1, 32>}, {pipeline_mode = #tpu.pipeline_mode<synchronous>, transform_indices = @transform_7, window_bounds = array<i64: 32, 128>}, {pipeline_mode = #tpu.pipeline_mode<synchronous>, transform_indices = @transform_8, window_bounds = array<i64: 1, 128>}, {transform_indices = @transform_9, window_bounds = array<i64: 16, 128>}]} {
    %c0 = arith.constant 0 : index
    %c0_0 = arith.constant 0 : index
    %0 = vector.load %arg1[%c0, %c0_0] : memref<16x32xbf16, #tpu.memory_space<vmem>>, vector<16x32xbf16>
    %c0_1 = arith.constant 0 : index
    %c0_2 = arith.constant 0 : index
    %1 = vector.load %arg2[%c0_1, %c0_2] : memref<16x32xbf16, #tpu.memory_space<vmem>>, vector<16x32xbf16>
    %c0_3 = arith.constant 0 : index
    %c0_4 = arith.constant 0 : index
    %2 = vector.load %arg3[%c0_3, %c0_4] : memref<32x32xbf16, #tpu.memory_space<vmem>>, vector<32x32xbf16>
    %cst = arith.constant dense<0.000000e+00> : vector<16x32xf32>
    %3 = tpu.matmul %0, %2, %cst {dimension_numbers = #tpu.dot_dimension_numbers<[1], [0], [0], [1], [0, 0, 1, 1], [], []>} : vector<16x32xbf16>, vector<32x32xbf16>, vector<16x32xf32> -> vector<16x32xf32>
    %c0_5 = arith.constant 0 : index
    %c0_6 = arith.constant 0 : index
    %4 = vector.load %arg4[%c0_5, %c0_6] : memref<32x32xbf16, #tpu.memory_space<vmem>>, vector<32x32xbf16>
    %cst_7 = arith.constant dense<0.000000e+00> : vector<16x32xf32>
    %5 = tpu.matmul %1, %4, %cst_7 {dimension_numbers = #tpu.dot_dimension_numbers<[1], [0], [0], [1], [0, 0, 1, 1], [], []>} : vector<16x32xbf16>, vector<32x32xbf16>, vector<16x32xf32> -> vector<16x32xf32>
    %6 = arith.addf %3, %5 : vector<16x32xf32>
    %c0_8 = arith.constant 0 : index
    %c0_9 = arith.constant 0 : index
    %7 = vector.load %arg5[%c0_8, %c0_9] : memref<1x32xf32, #tpu.memory_space<vmem>>, vector<1x32xf32>
    %8 = vector.broadcast %7 : vector<1x32xf32> to vector<16x32xf32>
    %9 = arith.addf %6, %8 : vector<16x32xf32>
    %10 = arith.negf %9 : vector<16x32xf32>
    %11 = math.exp %10 : vector<16x32xf32>
    %cst_10 = arith.constant 1.000000e+00 : f32
    %12 = vector.broadcast %cst_10 : f32 to vector<16x32xf32>
    %13 = arith.addf %12, %11 : vector<16x32xf32>
    %14 = arith.divf %12, %13 : vector<16x32xf32>
    %15 = arith.mulf %9, %14 : vector<16x32xf32>
    %16 = arith.truncf %15 : vector<16x32xf32> to vector<16x32xbf16>
    %c0_11 = arith.constant 0 : index
    %c0_12 = arith.constant 0 : index
    %17 = vector.load %arg6[%c0_11, %c0_12] : memref<32x32xbf16, #tpu.memory_space<vmem>>, vector<32x32xbf16>
    %cst_13 = arith.constant dense<0.000000e+00> : vector<16x32xf32>
    %18 = tpu.matmul %16, %17, %cst_13 {dimension_numbers = #tpu.dot_dimension_numbers<[1], [0], [0], [1], [0, 0, 1, 1], [], []>} : vector<16x32xbf16>, vector<32x32xbf16>, vector<16x32xf32> -> vector<16x32xf32>
    %c0_14 = arith.constant 0 : index
    %c0_15 = arith.constant 0 : index
    %19 = vector.load %arg7[%c0_14, %c0_15] : memref<1x32xf32, #tpu.memory_space<vmem>>, vector<1x32xf32>
    %20 = vector.broadcast %19 : vector<1x32xf32> to vector<16x32xf32>
    %21 = arith.addf %18, %20 : vector<16x32xf32>
    %22 = arith.negf %21 : vector<16x32xf32>
    %23 = math.exp %22 : vector<16x32xf32>
    %cst_16 = arith.constant 1.000000e+00 : f32
    %24 = vector.broadcast %cst_16 : f32 to vector<16x32xf32>
    %25 = arith.addf %24, %23 : vector<16x32xf32>
    %26 = arith.divf %24, %25 : vector<16x32xf32>
    %27 = arith.mulf %21, %26 : vector<16x32xf32>
    %28 = arith.truncf %27 : vector<16x32xf32> to vector<16x32xbf16>
    %c0_17 = arith.constant 0 : index
    %c0_18 = arith.constant 0 : index
    %29 = vector.load %arg8[%c0_17, %c0_18] : memref<32x128xbf16, #tpu.memory_space<vmem>>, vector<32x128xbf16>
    %cst_19 = arith.constant dense<0.000000e+00> : vector<16x128xf32>
    %30 = tpu.matmul %28, %29, %cst_19 {dimension_numbers = #tpu.dot_dimension_numbers<[1], [0], [0], [1], [0, 0, 1, 1], [], []>} : vector<16x32xbf16>, vector<32x128xbf16>, vector<16x128xf32> -> vector<16x128xf32>
    %c0_20 = arith.constant 0 : index
    %c0_21 = arith.constant 0 : index
    %31 = vector.load %arg9[%c0_20, %c0_21] : memref<1x128xf32, #tpu.memory_space<vmem>>, vector<1x128xf32>
    %32 = vector.broadcast %31 : vector<1x128xf32> to vector<16x128xf32>
    %33 = arith.addf %30, %32 : vector<16x128xf32>
    %c0_22 = arith.constant 0 : index
    %c0_23 = arith.constant 0 : index
    %34 = vector.load %arg10[%c0_22, %c0_23] : memref<16x128xf32, #tpu.memory_space<vmem>>, vector<16x128xf32>
    tpu.vector_store %arg10[%c0_22, %c0_23], %33 {strides = array<i32>} : memref<16x128xf32, #tpu.memory_space<vmem>>, vector<16x128xf32>,
    return
  }
  func.func @transform_0(%arg0: i32) -> (i32, i32) {
    %c0_i32 = arith.constant 0 : i32
    %c0_i32_0 = arith.constant 0 : i32
    return %arg0, %c0_i32 : i32, i32
  }
  func.func @transform_1(%arg0: i32) -> (i32, i32) {
    %c0_i32 = arith.constant 0 : i32
    %c0_i32_0 = arith.constant 0 : i32
    return %arg0, %c0_i32 : i32, i32
  }
  func.func @transform_2(%arg0: i32) -> (i32, i32) {
    %c0_i32 = arith.constant 0 : i32
    %c0_i32_0 = arith.constant 0 : i32
    %c0_i32_1 = arith.constant 0 : i32
    return %c0_i32, %c0_i32_0 : i32, i32
  }
  func.func @transform_3(%arg0: i32) -> (i32, i32) {
    %c0_i32 = arith.constant 0 : i32
    %c0_i32_0 = arith.constant 0 : i32
    %c0_i32_1 = arith.constant 0 : i32
    return %c0_i32, %c0_i32_0 : i32, i32
  }
  func.func @transform_4(%arg0: i32) -> (i32, i32) {
    %c0_i32 = arith.constant 0 : i32
    %c0_i32_0 = arith.constant 0 : i32
    %c0_i32_1 = arith.constant 0 : i32
    return %c0_i32, %c0_i32_0 : i32, i32
  }
  func.func @transform_5(%arg0: i32) -> (i32, i32) {
    %c0_i32 = arith.constant 0 : i32
    %c0_i32_0 = arith.constant 0 : i32
    %c0_i32_1 = arith.constant 0 : i32
    return %c0_i32, %c0_i32_0 : i32, i32
  }
  func.func @transform_6(%arg0: i32) -> (i32, i32) {
    %c0_i32 = arith.constant 0 : i32
    %c0_i32_0 = arith.constant 0 : i32
    %c0_i32_1 = arith.constant 0 : i32
    return %c0_i32, %c0_i32_0 : i32, i32
  }
  func.func @transform_7(%arg0: i32) -> (i32, i32) {
    %c0_i32 = arith.constant 0 : i32
    %c0_i32_0 = arith.constant 0 : i32
    %c0_i32_1 = arith.constant 0 : i32
    return %c0_i32, %c0_i32_0 : i32, i32
  }
  func.func @transform_8(%arg0: i32) -> (i32, i32) {
    %c0_i32 = arith.constant 0 : i32
    %c0_i32_0 = arith.constant 0 : i32
    %c0_i32_1 = arith.constant 0 : i32
    return %c0_i32, %c0_i32_0 : i32, i32
  }
  func.func @transform_9(%arg0: i32) -> (i32, i32) {
    %c0_i32 = arith.constant 0 : i32
    %c0_i32_0 = arith.constant 0 : i32
    return %arg0, %c0_i32 : i32, i32
  }
}

</mosaic_0001>

<bundles_post_ra>
// kernel: reward_predictor.1
= control target key start
LH: loop header
LB: loop body
LE: loop exit
PB: predicated region body
PF: predicated region fallthrough
CT: control target
= control target key end

     0   :  { %v440_v0 = vmov 0.0   ;;  %vm441_vm0 = vmmov 0   ;;  %vm62_vm1 = vcmask 261120   ;;  %s557_s3 = inlined_call_operand.vmem [shape: bf16[32,32], index: 3, kind: input, shape index: {}]   ;;  %s558_s2 = inlined_call_operand.vmem [shape: bf16[32,32], index: 2, kind: input, shape index: {}]   ;;  %s559_s1 = inlined_call_operand.vmem [shape: bf16[16,32], index: 1, kind: input, shape index: {}]   ;;  %s560_s0 = inlined_call_operand.vmem [shape: bf16[16,32], index: 0, kind: input, shape index: {}]   ;;  %s561_s5 = inlined_call_operand.vmem [shape: bf16[32,32], index: 5, kind: input, shape index: {}]   ;;  %s562_s4 = inlined_call_operand.vmem [shape: f32[1,32], index: 4, kind: input, shape index: {}]   ;;  %s563_s7 = inlined_call_operand.vmem [shape: bf16[32,128], index: 7, kind: input, shape index: {}]   ;;  %s564_s6 = inlined_call_operand.vmem [shape: f32[1,32], index: 6, kind: input, shape index: {}]   ;;  %s565_s8 = inlined_call_operand.vmem [shape: f32[1,128], index: 8, kind: input, shape index: {}]   ;;  %s566_s9 = inlined_call_operand.vmem [shape: f32[16,128], index: 9, kind: output, shape index: {}]  }
   0x1   :  { %380 = vmatprep.subr.bf16.mxu0 %v440_v0  ;;  %388 = vmatprep.subr.bf16.mxu1 %v440_v0  ;;  %v414_v1 = vld [vmem:[%s557_s3] sm:$0xff]   ;;  %v416_v3 = vld [vmem:[%s557_s3 + $0x8] sm:$0xff]  }
   0x2   :  { %v415_v2 = vld [vmem:[%s558_s2] sm:$0xff]   ;;  %384 = vmatprep.mubr.msk.bf16.mxu0 %vm441_vm0, %v440_v0  ;;  %392 = vmatprep.mubr.msk.bf16.mxu1 %vm441_vm0, %v440_v0  ;;  %v417_v4 = vld [vmem:[%s558_s2 + $0x8] sm:$0xff]  }
   0x3   :  { %381 = vmatpush3.bf16.msra.mxu0 %v414_v1  ;;  %389 = vmatpush3.bf16.msra.mxu1 %v415_v2  ;;  %v418_v5 = vld [vmem:[%s559_s1] sm:$0xff]   ;;  %v421_v8 = vld [vmem:[%s561_s5 + $0x8] sm:$0xff]  }
   0x4   :  { %382 = vmatprep.subr.bf16.mxu0 %v440_v0  ;;  %390 = vmatprep.subr.bf16.mxu1 %v440_v0  ;;  %v419_v6 = vld [vmem:[%s560_s0] sm:$0xff]   ;;  %v423_v34 = vld [vmem:[%s563_s7 + $0x8] sm:$0xff]  }
   0x5   :  { %v420_v7 = vld [vmem:[%s561_s5] sm:$0xff]  }
   0x6   :  { %v355_v11 = vld [vmem:[%s562_s4] ss:$0 sm:$0xff] }
   0x7   :  { %383 = vmatpush3.bf16.msra.mxu0 %v416_v3  ;;  %391 = vmatpush3.bf16.msra.mxu1 %v417_v4  ;;  %v422_v33 = vld [vmem:[%s563_s7] sm:$0xff]  }
   0x8   :  { %396 = vmatprep.subr.bf16.mxu0 %v440_v0  ;;  %404 = vmatprep.subr.bf16.mxu1 %v440_v0  ;;  %v358_v35 = vld [vmem:[%s564_s6] ss:$0 sm:$0xff] }
   0x9   :  { %v364_v53 = vld [vmem:[%s565_s8] ss:$0 sm:$0xff] }
   0xa   :  { %385 = vmatmul.mubr.msk.bf16.vlgmr.msra.gmra.mrb[0].mxu0 %vm62_vm1, %v418_v5  ;;  %393 = vmatmul.mubr.msk.bf16.vlgmr.msra.gmra.mrb[0].mxu1 %vm62_vm1, %v419_v6 }
   0xb   :  { %400 = vmatprep.mubr.msk.bf16.mxu0 %vm441_vm0, %v440_v0  ;;  %408 = vmatprep.mubr.msk.bf16.mxu1 %vm441_vm0, %v440_v0 }
   0xc   :  { %397 = vmatpush3.bf16.msra.mxu0 %v420_v7  ;;  %405 = vmatpush3.bf16.msra.mxu1 %v422_v33 }
   0xd   :  { %398 = vmatprep.subr.bf16.mxu0 %v440_v0  ;;  %406 = vmatprep.subr.bf16.mxu1 %v440_v0 }
  0x10   :  { %399 = vmatpush3.bf16.msra.mxu0 %v421_v8  ;;  %407 = vmatpush3.bf16.msra.mxu1 %v423_v34 }
  0xdd   :  { %v100_v9 = vpop.f32.mrb[0].mxu0  ;;  %v161_v10 = vpop.f32.mrb[0].mxu1 }
  0xde   :  { %v386_v12 = vpop.f32.mrb[1].mxu0  ;;  %v162_v13 = vadd.f32 %v161_v10, %v100_v9  ;;  %v394_v14 = vpop.f32.mrb[1].mxu1 }
  0xdf   :  { %v103_v15 = vpop.f32.mrb[2].mxu0  ;;  %v164_v16 = vpop.f32.mrb[2].mxu1 }
  0xe0   :  { %v387_v17 = vpop.f32.mrb[3].mxu0  ;;  %v175_v18 = vadd.f32 %v355_v11, %v162_v13  ;;  %v165_v19 = vadd.f32 %v164_v16, %v103_v15  ;;  %v395_v20 = vpop.f32.mrb[3].mxu1 }
  0xe2   :  { %v356_v21 = vmul.f32 -1.442695, %v175_v18  ;;  %v176_v22 = vadd.f32 %v355_v11, %v165_v19 }
  0xe4   :  { %424 = vpow2.f32 %v356_v21  ;;  %v357_v23 = vmul.f32 -1.442695, %v176_v22 }
  0xe6   :  { %426 = vpow2.f32 %v357_v23 }
  0xee   :  { %v425_v24 = vpop.eup %424 }
  0xef   :  { %v183_v25 = vadd.f32 1.0, %v425_v24 }
  0xf0   :  { %v427_v26 = vpop.eup %426 }
  0xf1   :  { %428 = vrcp.f32 %v183_v25  ;;  %v184_v27 = vadd.f32 1.0, %v427_v26 }
  0xf3   :  { %430 = vrcp.f32 %v184_v27 }
  0xfb   :  { %v429_v28 = vpop.eup %428 }
  0xfc   :  { %v189_v30 = vmul.f32 %v429_v28, %v175_v18 }
  0xfd   :  { %v431_v29 = vpop.eup %430 }
  0xfe   :  { %v190_v31 = vmul.f32 %v431_v29, %v176_v22 }
 0x100   :  { %v191_v32 = vpack.c.bf16 %v190_v31, %v189_v30 }
 0x102   :  { %401 = vmatmul.mubr.msk.bf16.vlgmr.msra.gmra.mrb[4].mxu0 %vm62_vm1, %v191_v32 }
 0x1d5   :  { %v252_v36 = vpop.f32.mrb[4].mxu0 }
 0x1d6   :  { %v253_v37 = vadd.f32 %v358_v35, %v252_v36  ;;  %v402_v38 = vpop.f32.mrb[5].mxu0 }
 0x1d7   :  { %v255_v39 = vpop.f32.mrb[6].mxu0 }
 0x1d8   :  { %v362_v40 = vmul.f32 -1.442695, %v253_v37  ;;  %v256_v41 = vadd.f32 %v358_v35, %v255_v39  ;;  %v403_v42 = vpop.f32.mrb[7].mxu0 }
 0x1da   :  { %432 = vpow2.f32 %v362_v40  ;;  %v363_v43 = vmul.f32 -1.442695, %v256_v41 }
 0x1dc   :  { %434 = vpow2.f32 %v363_v43 }
 0x1e4   :  { %v433_v44 = vpop.eup %432 }
 0x1e5   :  { %v265_v45 = vadd.f32 1.0, %v433_v44 }
 0x1e6   :  { %v435_v46 = vpop.eup %434 }
 0x1e7   :  { %436 = vrcp.f32 %v265_v45  ;;  %v266_v47 = vadd.f32 1.0, %v435_v46 }
 0x1e9   :  { %438 = vrcp.f32 %v266_v47 }
 0x1f1   :  { %v437_v48 = vpop.eup %436 }
 0x1f2   :  { %v271_v50 = vmul.f32 %v437_v48, %v253_v37 }
 0x1f3   :  { %v439_v49 = vpop.eup %438 }
 0x1f4   :  { %v272_v51 = vmul.f32 %v439_v49, %v256_v41 }
 0x1f6   :  { %v273_v52 = vpack.c.bf16 %v272_v51, %v271_v50 }
 0x1f8   :  { %409 = vmatmul.mubr.msk.bf16.vlgmr.msra.gmra.mrb[4].mxu1 %vm62_vm1, %v273_v52 }
 0x2cb   :  { %v334_v54 = vpop.f32.mrb[4].mxu1 }
 0x2cc   :  { %v335_v55 = vadd.f32 %v364_v53, %v334_v54  ;;  %v410_v56 = vpop.f32.mrb[5].mxu1 }
 0x2cd   :  { %v337_v57 = vpop.f32.mrb[6].mxu1 }
 0x2ce   :  { %341 = vst [vmem:[%s566_s9] sm:$0xff] %v335_v55  ;;  %v338_v58 = vadd.f32 %v364_v53, %v337_v57  ;;  %v411_v59 = vpop.f32.mrb[7].mxu1 }
 0x2d0   :  { %342 = vst [vmem:[%s566_s9 + $0x8] sm:$0xff] %v338_v58 }

</bundles_post_ra>
